<compile_context>
chip_gen: v6e
topology: v6e:2x2x1
jax: 0.10.0
libtpu: 0.0.40
codegen_flags: <defaults>
</compile_context>

<pallas_src>
import jax
import jax.numpy as jnp
from jax.experimental import pallas as pl
from jax.experimental.pallas import tpu as pltpu


def _gelu_tanh(x):
    # Matches torch.nn.functional.gelu(x, approximate='tanh'); x is f32 here.
    c = jnp.sqrt(2.0 / jnp.pi).astype(x.dtype)
    return 0.5 * x * (1.0 + jnp.tanh(c * (x + 0.044715 * (x * x * x))))


def _mlp_kernel(x_ref, w1_ref, w2_ref, o_ref, acc_ref):
    # x_ref : (tm, H)  resident across all F steps of a token tile
    # w1_ref: (H, tf)
    # w2_ref: (tf, H)
    # o_ref : (tm, H)  written once, at the last F step
    # acc_ref: (tm, H) f32 accumulator in VMEM
    f = pl.program_id(2)

    @pl.when(f == 0)
    def _():
        acc_ref[...] = jnp.zeros_like(acc_ref)

    # First matmul fully contracts H inside this block, so applying the
    # elementwise GELU to the (tm, tf) tile is exact.  GELU (EUP/VPU) is free
    # filler under the MXU slot.
    h = jnp.dot(x_ref[...], w1_ref[...], preferred_element_type=jnp.float32)
    h = _gelu_tanh(h)

    # Second matmul: partial contraction over this F tile, f32 accumulation.
    acc_ref[...] += jnp.dot(h.astype(w2_ref.dtype), w2_ref[...],
                            preferred_element_type=jnp.float32)

    @pl.when(f == pl.num_programs(2) - 1)
    def _():
        o_ref[...] = acc_ref[...].astype(o_ref.dtype)


# ----------------------------------------------------------------------------
# Tile / VMEM planning helpers
# ----------------------------------------------------------------------------

def _divisor_candidates(dim, target, quanta):
    """Divisors of `dim` that are <= target, preferring multiples of the
    quanta (in order), largest first.  Always returns at least one value."""
    cands = []
    seen = set()
    if dim <= target:
        return [dim]
    for q in quanta:
        t = (min(target, dim) // q) * q
        while t >= q:
            if dim % t == 0 and t not in seen:
                cands.append(t)
                seen.add(t)
            t -= q
    if not cands:
        # Awkward (prime-ish) dim: any divisor <= target, largest first.
        for t in range(min(target, dim), 0, -1):
            if dim % t == 0:
                cands.append(t)
                break
    if not cands:
        cands.append(dim)
    return cands


def _block_bytes(tm, tf, H, in_bytes, out_bytes):
    """Approximate VMEM footprint of one grid step (double-buffered blocks)."""
    return (2 * tm * H * in_bytes                 # x, double-buffered
            + 2 * (H * tf + tf * H) * in_bytes    # w1 + w2, double-buffered
            + 2 * tm * H * out_bytes              # out, double-buffered
            + tm * H * 4                          # f32 accumulator scratch
            + tm * tf * 4)                        # gelu tile (vregs / spill)


def _chip_config():
    """Generation-aware tiling targets and VMEM capacity."""
    vmem_cap = 128 << 20
    try:
        vmem_cap = int(pltpu.get_tpu_info().vmem_capacity_bytes)
    except Exception:
        pass
    kind = ""
    try:
        kind = jax.devices()[0].device_kind.lower()
    except Exception:
        pass

    if vmem_cap <= (64 << 20) or "v7" in kind:
        # v7x: ridge ~310 flops/byte, only 64 MiB physical VMEM per TC.
        return dict(tm_target=512, tf_target=256,
                    tm_quanta=(256, 16, 8), tf_quanta=(256, 128),
                    vmem_cap=min(vmem_cap, 64 << 20))
    if "v5" in kind:
        # v5e: ridge ~240 flops/byte; 128-wide MXU -> 128-granular tf is fine.
        return dict(tm_target=256, tf_target=512,
                    tm_quanta=(256, 16, 8), tf_quanta=(128,),
                    vmem_cap=vmem_cap)
    # v6e (default): ridge ~650 flops/byte -> big token tiles, keep tf >= 512.
    return dict(tm_target=1024, tf_target=512,
                tm_quanta=(256, 16, 8), tf_quanta=(256, 128),
                vmem_cap=vmem_cap)


def _plan_tiles(T, F, H, in_bytes, out_bytes, cfg, tm=None, tf=None):
    """Pick (tm, tf) that divide (T, F), respect MXU/vreg quanta and fit the
    VMEM budget.  Shrinks tf before tm (tm sets arithmetic intensity)."""
    budget = int(0.75 * cfg["vmem_cap"])

    tm_cands = ([tm] if tm is not None
                else _divisor_candidates(T, cfg["tm_target"], cfg["tm_quanta"]))
    tf_cands = ([tf] if tf is not None
                else _divisor_candidates(F, cfg["tf_target"], cfg["tf_quanta"]))

    for tm_c in tm_cands:
        for tf_c in tf_cands:
            if _block_bytes(tm_c, tf_c, H, in_bytes, out_bytes) <= budget:
                return tm_c, tf_c
    raise ValueError(
        f"Could not fit MLP tiles in VMEM budget ({budget} bytes): "
        f"T={T}, F={F}, H={H}; smallest candidate "
        f"tm={tm_cands[-1]}, tf={tf_cands[-1]}.")


# ----------------------------------------------------------------------------
# Wrapper
# ----------------------------------------------------------------------------

def moe_mlp(x, w1, w2, *, tm=None, tf=None):
    """out[e] = gelu_tanh(x[e] @ w1[e]) @ w2[e].

    Inputs are consumed in their given dtypes (keep weights at rest in bf16
    for MXU throughput); no per-call casts are performed here, per review.
    """
    E, T, H = x.shape
    E1, H1, F = w1.shape
    E2, F2, H2 = w2.shape
    assert (E1, H1) == (E, H), "w1 shape mismatch"
    assert (E2, F2, H2) == (E, F, H), "w2 shape mismatch"

    out_dtype = x.dtype
    in_bytes = jnp.dtype(x.dtype).itemsize
    out_bytes = jnp.dtype(out_dtype).itemsize

    cfg = _chip_config()
    tm, tf = _plan_tiles(T, F, H, in_bytes, out_bytes, cfg, tm=tm, tf=tf)
    assert T % tm == 0 and F % tf == 0, "T/F must be divisible by tm/tf"

    grid = (E, T // tm, F // tf)

    block_bytes = _block_bytes(tm, tf, H, in_bytes, out_bytes)
    # Scoped-VMEM limit: enough for the pipelined blocks + headroom, clamped
    # to the chip's physical VMEM (never above it -- v7x is only 64 MiB).
    vmem_limit = int(min(max(int(1.25 * block_bytes), 32 << 20),
                         int(0.85 * cfg["vmem_cap"])))

    cost = pl.CostEstimate(
        flops=4 * E * T * H * F,
        transcendentals=E * T * F,
        bytes_accessed=(E * T * H * in_bytes                    # x read
                        + 2 * E * H * F * in_bytes * (T // tm)  # w1+w2 reads
                        + E * T * H * out_bytes),                # out write
    )

    return pl.pallas_call(
        _mlp_kernel,
        out_shape=jax.ShapeDtypeStruct((E, T, H), out_dtype),
        grid_spec=pltpu.PrefetchScalarGridSpec(
            num_scalar_prefetch=0,
            grid=grid,
            in_specs=[
                # x: independent of f -> stays resident across the F loop.
                pl.BlockSpec((None, tm, H), lambda e, t, f: (e, t, 0)),
                # Weights: independent of the token-tile index.
                pl.BlockSpec((None, H, tf), lambda e, t, f: (e, 0, f)),
                pl.BlockSpec((None, tf, H), lambda e, t, f: (e, f, 0)),
            ],
            # Same block across f -> accumulator pattern.
            out_specs=pl.BlockSpec((None, tm, H), lambda e, t, f: (e, t, 0)),
            scratch_shapes=[pltpu.VMEM((tm, H), jnp.float32)],
        ),
        compiler_params=pltpu.CompilerParams(
            # E first so a 2-TC chip shards experts (disjoint weight streams).
            dimension_semantics=("parallel", "parallel", "arbitrary"),
            vmem_limit_bytes=vmem_limit,
        ),
        cost_estimate=cost,
    )(x, w1, w2)


def reference(x, w1, w2):
    h = jax.nn.gelu(jnp.einsum("eth,ehf->etf", x, w1), approximate=True)
    return jnp.einsum("etf,efh->eth", h, w2)


if __name__ == "__main__":
    # Small shapes consistent with the module (experts_per_rank=2,
    # tokens_per_expert=128, hidden_size=128, ffn_hidden_size=512).
    E, T, H, F = 2, 128, 128, 512
    key = jax.random.PRNGKey(0)
    kx, k1, k2 = jax.random.split(key, 3)

    # Operands created directly in bf16 (weights "at rest" in compute dtype),
    # so the wrapper performs no per-call casts.
    x = jax.random.normal(kx, (E, T, H), dtype=jnp.float32).astype(jnp.bfloat16)
    w1 = (jax.random.normal(k1, (E, H, F), dtype=jnp.float32) * 0.02
          ).astype(jnp.bfloat16)
    w2 = (jax.random.normal(k2, (E, F, H), dtype=jnp.float32) * 0.02
          ).astype(jnp.bfloat16)

    # Force small tiles so the tiled grid (2, 2, 2) and the f32-accumulator
    # reduction path are actually exercised at these toy shapes.
    out = moe_mlp(x, w1, w2, tm=64, tf=256)
    out = jax.block_until_ready(out)

    # Reference in f32 from the same bf16-rounded operands the kernel sees.
    ref = reference(x.astype(jnp.float32), w1.astype(jnp.float32),
                    w2.astype(jnp.float32))

    assert out.shape == (E, T, H)
    assert out.dtype == x.dtype
    # Tolerance reflects bf16 rounding of the GELU intermediate before the
    # second (f32-accumulated) matmul, matching a bf16 torch bmm.
    assert jnp.allclose(out.astype(jnp.float32), ref, atol=2e-2, rtol=2e-2), \
        "mismatch vs reference"

    print("KERNEL_OK")
</pallas_src>

<mosaic_0001>
module attributes {stable_mosaic.version = 11 : i64} {
  func.func @_mlp_kernel(%arg0: i32, %arg1: i32, %arg2: i32, %arg3: memref<1x64x128xbf16, #tpu.memory_space<vmem>>, %arg4: memref<1x128x256xbf16, #tpu.memory_space<vmem>>, %arg5: memref<1x256x128xbf16, #tpu.memory_space<vmem>>, %arg6: memref<1x64x128xbf16, #tpu.memory_space<vmem>>, %arg7: memref<64x128xf32, #tpu.memory_space<vmem>>) attributes {dimension_semantics = [#tpu.dimension_semantics<parallel>, #tpu.dimension_semantics<parallel>, #tpu.dimension_semantics<arbitrary>], iteration_bounds = array<i64: 2, 2, 2>, scalar_prefetch = 0 : i64, scratch_operands = 1 : i64, tpu.core_type = #tpu.core_type<tc>, window_params = [{transform_indices = @transform_0, window_bounds = array<i64: 1, 64, 128>}, {transform_indices = @transform_1, window_bounds = array<i64: 1, 128, 256>}, {transform_indices = @transform_2, window_bounds = array<i64: 1, 256, 128>}, {transform_indices = @transform_3, window_bounds = array<i64: 1, 64, 128>}]} {
    %c0_i32 = arith.constant 0 : i32
    %0 = arith.cmpi eq, %arg2, %c0_i32 : i32
    %1 = arith.extui %0 : i1 to i32
    %c0_i32_0 = arith.constant 0 : i32
    %2 = arith.cmpi ne, %1, %c0_i32_0 : i32
    scf.if %2 {
      %cst_19 = arith.constant 0.000000e+00 : f32
      %32 = vector.broadcast %cst_19 : f32 to vector<64x128xf32>
      %c0_20 = arith.constant 0 : index
      %c0_21 = arith.constant 0 : index
      %33 = vector.load %arg7[%c0_20, %c0_21] : memref<64x128xf32, #tpu.memory_space<vmem>>, vector<64x128xf32>
      tpu.vector_store %arg7[%c0_20, %c0_21], %32 {strides = array<i32>} : memref<64x128xf32, #tpu.memory_space<vmem>>, vector<64x128xf32>,
    } else {
    }
    %c0 = arith.constant 0 : index
    %c0_1 = arith.constant 0 : index
    %c0_2 = arith.constant 0 : index
    %3 = vector.load %arg3[%c0, %c0_1, %c0_2] : memref<1x64x128xbf16, #tpu.memory_space<vmem>>, vector<1x64x128xbf16>
    %4 = vector.shape_cast %3 : vector<1x64x128xbf16> to vector<64x128xbf16>
    %c0_3 = arith.constant 0 : index
    %c0_4 = arith.constant 0 : index
    %c0_5 = arith.constant 0 : index
    %5 = vector.load %arg4[%c0_3, %c0_4, %c0_5] : memref<1x128x256xbf16, #tpu.memory_space<vmem>>, vector<1x128x256xbf16>
    %6 = vector.shape_cast %5 : vector<1x128x256xbf16> to vector<128x256xbf16>
    %cst = arith.constant dense<0.000000e+00> : vector<64x256xf32>
    %7 = tpu.matmul %4, %6, %cst {dimension_numbers = #tpu.dot_dimension_numbers<[1], [0], [0], [1], [0, 0, 1, 1], [], []>} : vector<64x128xbf16>, vector<128x256xbf16>, vector<64x256xf32> -> vector<64x256xf32>
    %cst_6 = arith.constant 0.636619746 : f32
    %8 = math.sqrt %cst_6 : f32
    %cst_7 = arith.constant 5.000000e-01 : f32
    %9 = vector.broadcast %cst_7 : f32 to vector<64x256xf32>
    %10 = arith.mulf %9, %7 : vector<64x256xf32>
    %11 = arith.mulf %7, %7 : vector<64x256xf32>
    %12 = arith.mulf %11, %7 : vector<64x256xf32>
    %cst_8 = arith.constant 4.471500e-02 : f32
    %13 = vector.broadcast %cst_8 : f32 to vector<64x256xf32>
    %14 = arith.mulf %13, %12 : vector<64x256xf32>
    %15 = arith.addf %7, %14 : vector<64x256xf32>
    %16 = vector.broadcast %8 : f32 to vector<64x256xf32>
    %17 = arith.mulf %16, %15 : vector<64x256xf32>
    %18 = math.tanh %17 : vector<64x256xf32>
    %cst_9 = arith.constant 1.000000e+00 : f32
    %19 = vector.broadcast %cst_9 : f32 to vector<64x256xf32>
    %20 = arith.addf %19, %18 : vector<64x256xf32>
    %21 = arith.mulf %10, %20 : vector<64x256xf32>
    %c0_10 = arith.constant 0 : index
    %c0_11 = arith.constant 0 : index
    %22 = vector.load %arg7[%c0_10, %c0_11] : memref<64x128xf32, #tpu.memory_space<vmem>>, vector<64x128xf32>
    %23 = arith.truncf %21 : vector<64x256xf32> to vector<64x256xbf16>
    %c0_12 = arith.constant 0 : index
    %c0_13 = arith.constant 0 : index
    %c0_14 = arith.constant 0 : index
    %24 = vector.load %arg5[%c0_12, %c0_13, %c0_14] : memref<1x256x128xbf16, #tpu.memory_space<vmem>>, vector<1x256x128xbf16>
    %25 = vector.shape_cast %24 : vector<1x256x128xbf16> to vector<256x128xbf16>
    %cst_15 = arith.constant dense<0.000000e+00> : vector<64x128xf32>
    %26 = tpu.matmul %23, %25, %cst_15 {dimension_numbers = #tpu.dot_dimension_numbers<[1], [0], [0], [1], [0, 0, 1, 1], [], []>} : vector<64x256xbf16>, vector<256x128xbf16>, vector<64x128xf32> -> vector<64x128xf32>
    %27 = arith.addf %22, %26 : vector<64x128xf32>
    %c0_16 = arith.constant 0 : index
    %c0_17 = arith.constant 0 : index
    %28 = vector.load %arg7[%c0_16, %c0_17] : memref<64x128xf32, #tpu.memory_space<vmem>>, vector<64x128xf32>
    tpu.vector_store %arg7[%c0_16, %c0_17], %27 {strides = array<i32>} : memref<64x128xf32, #tpu.memory_space<vmem>>, vector<64x128xf32>,
    %c1_i32 = arith.constant 1 : i32
    %29 = arith.cmpi eq, %arg2, %c1_i32 : i32
    %30 = arith.extui %29 : i1 to i32
    %c0_i32_18 = arith.constant 0 : i32
    %31 = arith.cmpi ne, %30, %c0_i32_18 : i32
    scf.if %31 {
      %c0_19 = arith.constant 0 : index
      %c0_20 = arith.constant 0 : index
      %32 = vector.load %arg7[%c0_19, %c0_20] : memref<64x128xf32, #tpu.memory_space<vmem>>, vector<64x128xf32>
      %33 = arith.truncf %32 : vector<64x128xf32> to vector<64x128xbf16>
      %c0_21 = arith.constant 0 : index
      %c0_22 = arith.constant 0 : index
      %c0_23 = arith.constant 0 : index
      %34 = vector.load %arg6[%c0_21, %c0_22, %c0_23] : memref<1x64x128xbf16, #tpu.memory_space<vmem>>, vector<1x64x128xbf16>
      %35 = vector.shape_cast %34 : vector<1x64x128xbf16> to vector<64x128xbf16>
      %36 = vector.shape_cast %33 : vector<64x128xbf16> to vector<1x64x128xbf16>
      tpu.vector_store %arg6[%c0_21, %c0_22, %c0_23], %36 {strides = array<i32>} : memref<1x64x128xbf16, #tpu.memory_space<vmem>>, vector<1x64x128xbf16>,
    } else {
    }
    return
  }
  func.func @transform_0(%arg0: i32, %arg1: i32, %arg2: i32) -> (i32, i32, i32) {
    %c0_i32 = arith.constant 0 : i32
    %c0_i32_0 = arith.constant 0 : i32
    return %arg0, %arg1, %c0_i32 : i32, i32, i32
  }
  func.func @transform_1(%arg0: i32, %arg1: i32, %arg2: i32) -> (i32, i32, i32) {
    %c0_i32 = arith.constant 0 : i32
    %c0_i32_0 = arith.constant 0 : i32
    return %arg0, %c0_i32, %arg2 : i32, i32, i32
  }
  func.func @transform_2(%arg0: i32, %arg1: i32, %arg2: i32) -> (i32, i32, i32) {
    %c0_i32 = arith.constant 0 : i32
    %c0_i32_0 = arith.constant 0 : i32
    return %arg0, %arg2, %c0_i32 : i32, i32, i32
  }
  func.func @transform_3(%arg0: i32, %arg1: i32, %arg2: i32) -> (i32, i32, i32) {
    %c0_i32 = arith.constant 0 : i32
    %c0_i32_0 = arith.constant 0 : i32
    return %arg0, %arg1, %c0_i32 : i32, i32, i32
  }
}

</mosaic_0001>

<bundles_post_ra>
// kernel: tpu_custom_call.1
= control target key start
LH: loop header
LB: loop body
LE: loop exit
PB: predicated region body
PF: predicated region fallthrough
CT: control target
= control target key end

     0   :  { %s2207_s0 = inlined_call_operand.hbm [shape: bf16[2,128,128], index: 0, kind: input, shape index: {}]   ;;  %s2208_s1 = inlined_call_operand.hbm [shape: bf16[2,128,512], index: 1, kind: input, shape index: {}]   ;;  %s2209_s2 = inlined_call_operand.hbm [shape: bf16[2,512,128], index: 2, kind: input, shape index: {}]   ;;  %s2210_s3 = inlined_call_operand.hbm [shape: bf16[2,128,128], index: 3, kind: output, shape index: {}]  }
   0x1   :  { %2228 = sst [smem:[#allocation26_spill]] %s2207_s0 }
   0x2   :  { %2229 = sst [smem:[#allocation27_spill]] %s2208_s1 }
   0x3   :  { %2230 = sst [smem:[#allocation28_spill]] %s2210_s3 }
   0x4   :  { %8 = vsyncpa [#allocation4], 0 }
   0x5   :  { %10 = vsyncpa [#allocation4 + $0x1], 0 }
   0x6   :  { %11 = vsyncpa [#allocation7], 0 }
   0x7   :  { %13 = vsyncpa [#allocation7 + $0x1], 0 }
   0x8   :  { %14 = vsyncpa [#allocation5], 0 }
   0x9   :  { %16 = vsyncpa [#allocation5 + $0x1], 0  ;;  %s1715_s12 = smov 0   ;;  %s1717_s13 = smov 0  }
   0xa   :  { %s1719_s14 = smov 0   ;;  %s1721_s15 = smov 0  }
   0xb   :  { %s1723_s16 = smov 0   ;;  %s1725_s17 = smov 0  }
   0xc   :  { %s1727_s18 = smov 0   ;;  %s1729_s19 = smov 0  }
   0xd   :  { %s1731_s20 = smov 0   ;;  %s1733_s21 = smov 0  }
   0xe   :  { %s1735_s22 = smov 0   ;;  %s1737_s23 = smov 0  }
   0xf   :  { %s1739_s24 = smov 0  }
  0x10 LB: > { %2231 = sst [smem:[#allocation13_spill]] %s1636_s13  ;;  %s34_s25 = sadd.s32 1, %s1668_s21  ;;  %s1680_s24 = sphi %s1739_s24, %s22_s24   ;;  %s1676_s23 = sphi %s1737_s23, %s2290_s23   ;;  %s1672_s22 = sphi %s1735_s22, %s2289_s22   ;;  %s1668_s21 = sphi %s1733_s21, %s2288_s21   ;;  %s1664_s20 = sphi %s1731_s20, %s2287_s20   ;;  %s1660_s19 = sphi %s1729_s19, %s2286_s19   ;;  %s1656_s18 = sphi %s1727_s18, %s2285_s18   ;;  %s1652_s17 = sphi %s1725_s17, %s2284_s17   ;;  %s1648_s16 = sphi %s1723_s16, %s2283_s16   ;;  %s1644_s15 = sphi %s1721_s15, %s2278_s15   ;;  %s1640_s14 = sphi %s1719_s14, %s2282_s14   ;;  %s1636_s13 = sphi %s1717_s13, %s2281_s13   ;;  %s1632_s12 = sphi %s1715_s12, %s2277_s12  }
  0x11   : > { %2232 = sst [smem:[#allocation14_spill]] %s1644_s15  ;;  %p1782_p0 = scmp.ge.s32.totalorder %s34_s25, 2 }
  0x12   : > { %2233 = sst [smem:[#allocation15_spill]] %s1648_s16  ;;  %p58_p1 = scmp.eq.s32.totalorder %s1680_s24, 0 }
  0x13   : > { %2234 = sst [smem:[#allocation16_spill]] %s1656_s18  ;;  %p85_p2 = scmp.ne.s32.totalorder %s1640_s14, %s1636_s13 }
  0x14   : > { %2235 = sst [smem:[#allocation17_spill]] %s1660_s19  ;;  %s2292_s25 = smov (%p1782_p0, %s34_s25), 0 }
  0x15   : > { %2236 = sst [smem:[#allocation18_spill]] %s1664_s20  ;;  %p1796_p3 = por %p85_p2, %p58_p1 }
  0x16   : > { %p91_p4 = scmp.ne.s32.totalorder %s1636_s13, %s1632_s12  ;;  %p2213_p5 = scmp.lt.s32.totalorder %s1680_s24, 8 }
  0x17   : > { %s194_s4 = sand.u32 1, %s1680_s24   ;;  %s196_s5 = sand.u32 1, %s1640_s14  }
  0x18   : > { %s1807_s6 = sshll.u32 %s196_s5, 7  ;;  %s1108_s7 = sshll.u32 %s1668_s21, 1 }
  0x19   : > { %s2214_s8 = sshll.u32 %s1676_s23, 6  ;;  %s198_s10 = scalar_lea.vmem [#allocation6], %s1807_s6 }
  0x1a   : > { %s204_s9 = sadd.s32 %s2214_s8, %s1108_s7  ;;  %s207_s11 = sshll.u32 %s198_s10, 4  ;;  %s208_s11 = int_to_ptr.vmem [resolvable:$true] %s207_s11 }
  0x1b   : > { %s1110_s28 = sshll.u32 %s204_s9, 6  ;;  %s2239_s1 = sld [smem:[#allocation27_spill]] }
  0x1c   : > { %p1821_p6 = pnand %p2213_p5, %p1796_p3  ;;  %s1825_s5 = scalar_lea.sflag [#allocation7], %s194_s4 }
  0x1d   : > { %s1469_s7 = scalar_lea.vmem %s208_s11, 2048  ;;  %s1682_s3 = smov [#allocation6]  }
  0x1e   : > { %p2212_p7 = pneg %p1821_p6  ;;  %p1470_p8 = scmp.ne.s32.totalorder %s208_s11, %s1469_s7 }
  0x1f   : > { %s1474_s26 = sshll.u32 %s1682_s3, 4  ;;  %s1475_s26 = int_to_ptr.vmem [resolvable:$false] %s1474_s26 }
  0x20   : > { %p1472_p9 = pnand %p1470_p8, %p2212_p7  ;;  %p1477_p11 = scmp.lt.s32.totalorder %s208_s11, %s1475_s26 }
  0x21   : > { %s206_s20 = scalar_lea.hbm %s2239_s1, %s1110_s28  ;;  %s1476_s28 = scalar_lea.vmem %s1475_s26, 4096 }
  0x22   : > { %p1473_p10 = pneg %p1472_p9  ;;  %p1478_p12 = scmp.lt.s32.totalorder %s1476_s28, %s1469_s7 }
  0x24   : > { %p1479_p13 = por %p1478_p12, %p1477_p11 }
  0x26   : > { %p1480_p2 = pnand %p1479_p13, %p1473_p10 }
  0x28   : > { %1483 = shalt.err (!%p1480_p2)
}
  0x29   : > { %s1683_s29 = smov 256   ;;  %s1684_s4 = smov 128  }
  0x2a   : > { %s1685_s9 = smov 8   ;;  %p1115_p3 = scmp.ge.s32.totalorder %s1680_s24, 1 }
  0x2b   : > { %1257 = dma.hbm_to_vmem [thread:$0]  (!%p1821_p6), %s206_s20, 2048, %s208_s11, %s1825_s5, %s1683_s29, %s1684_s4, %s1685_s9  }
  0x2c   : > { %p238_p8 = scmp.lt.s32.totalorder %s1680_s24, 9  ;;  %s1842_s7 = sadd.s32 4294967295, %s1680_s24  }
  0x2d   : > { %2242 = sst [smem:[#allocation19_spill]] %s1842_s7  ;;  %s1100_s3 = sadd.s32 4294967294, %s1680_s24  }
  0x2e   : > { %p1837_p9 = pnand %p1115_p3, %p238_p8  ;;  %s37_s26 = sadd.s32 1, %s1672_s22 }
  0x2f   : > { %s2294_s26 = smov (!%p1782_p0, %s37_s26), %s1672_s22  ;;  %s50_s20 = sadd.s32 1, %s1652_s17 }
  0x30   : > { %p57_p10 = scmp.ne.s32.totalorder %s1652_s17, %s1648_s16  ;;  %p39_p11 = scmp.ge.s32.totalorder %s2294_s26, 2 }
  0x31   : > { %p63_p12 = scmp.ne.s32.totalorder %s1648_s16, %s1644_s15  ;;  %p64_p2 = scmp.eq.s32.totalorder %s1842_s7, 0 }
  0x32   : > { %p1859_p13 = por %p58_p1, %p57_p10  ;;  %s2296_s26 = smov (%p39_p11, %s2294_s26), 0 }
  0x33   : > { %2244 = sst [smem:[#allocation20_spill]] %s2296_s26  ;;  %s2245_s27 = sadd.s32 1, %s1676_s23 }
  0x34   : > { %s2298_s27 = smov (!%p39_p11, %s2245_s27), %s1676_s23  ;;  %s46_s28 = ssub.s32 %s1672_s22, %s2296_s26 }
  0x35   : > { %p1874_p0 = por %p64_p2, %p63_p12  ;;  %p43_p1 = scmp.ge.s32.totalorder %s2298_s27, 2 }
  0x36   : > { %p1881_p3 = por %p91_p4, %p64_p2  ;;  %p145_p8 = scmp.eq.s32.totalorder %s1842_s7, 7 }
  0x37   : > { %s2246_s29 = scalar_select %p1874_p0, 1, 0 }
  0x38   : > { %s2248_s4 = scalar_select %p1881_p3, 1, 0 }
  0x39   : > { %2247 = sst [smem:[#allocation21_spill]] %s2246_s29  ;;  %p151_p7 = scmp.eq.s32.totalorder %s1100_s3, 7 }
  0x3a   : > { %2249 = sst [smem:[#allocation22_spill]] %s2248_s4  ;;  %s2300_s27 = smov (%p43_p1, %s2298_s27), 0 }
  0x3b   : > { %2250 = sst [smem:[#allocation23_spill]] %s2300_s27  ;;  %p1891_p11 = por %p145_p8, %p57_p10 }
  0x3c   : > { %p1898_p5 = por %p151_p7, %p63_p12  ;;  %s45_s12 = ssub.s32 %s1676_s23, %s2300_s27 }
  0x3d   : > { %s2251_s9 = scalar_select %p1891_p11, 1, 0 }
  0x3e   : > { %s2253_s8 = scalar_select %p1898_p5, 1, 0 }
  0x3f   : > { %2252 = sst [smem:[#allocation24_spill]] %s2251_s9  ;;  %s171_s1 = sand.u32 1, %s1652_s17  }
  0x40   : > { %2254 = sst [smem:[#allocation25_spill]] %s2253_s8  ;;  %s47_s26 = sor.u32 %s46_s28, %s45_s12 }
  0x41   : > { %s2255_s19 = ssub.s32 %s1668_s21, %s2292_s25  ;;  %p48_p4 = scmp.eq.s32.totalorder %s47_s26, 0 }
  0x42   : > { %s75_s3 = sor.u32 %s2255_s19, %s45_s12  ;;  %s1103_s18 = sshll.u32 %s171_s1, 5 }
  0x43   : > { %p76_p2 = scmp.eq.s32.totalorder %s75_s3, 0  ;;  %s2256_s13 = sadd.s32 1, %s1640_s14 }
  0x44   : > { %s1909_s4 = scalar_select %p48_p4, %s1652_s17, %s50_s20  }
  0x45   : > { %s1914_s7 = scalar_select %p76_p2, %s1640_s14, %s2256_s13  }
  0x46   : > { %s1104_s15 = sshll.u32 %s1672_s22, 3  ;;  %s1105_s9 = sshll.u32 %s1676_s23, 4 }
  0x47   : > { %s175_s29 = scalar_lea.vmem [#allocation3], %s1103_s18  ;;  %s181_s8 = sadd.s32 %s1105_s9, %s1104_s15 }
  0x48   : > { %s184_s16 = sshll.u32 %s175_s29, 4  ;;  %s1106_s27 = sshll.u32 %s181_s8, 6  ;;  %s185_s16 = int_to_ptr.vmem [resolvable:$true] %s184_s16 }
  0x49   : > { %p2257_p7 = scmp.lt.s32.totalorder %s1680_s24, 8  ;;  %s2259_s0 = sld [smem:[#allocation26_spill]] }
  0x4a   : > { %s172_s13 = scalar_lea.sflag [#allocation4], %s171_s1  ;;  %s1497_s12 = scalar_lea.vmem %s185_s16, 512 }
  0x4b   : > { %p1922_p10 = pnand %p2257_p7, %p1859_p13  ;;  %p1498_p1 = scmp.ne.s32.totalorder %s185_s16, %s1497_s12 }
  0x4c   : > { %s1686_s15 = smov [#allocation3]  }
  0x4d   : > { %p1486_p12 = pneg %p1922_p10  ;;  %s1502_s18 = sshll.u32 %s1686_s15, 4  ;;  %s1503_s18 = int_to_ptr.vmem [resolvable:$false] %s1502_s18 }
  0x4e   : > { %s1504_s8 = scalar_lea.vmem %s1503_s18, 1024  ;;  %p1505_p13 = scmp.lt.s32.totalorder %s185_s16, %s1503_s18 }
  0x4f   : > { %s183_s20 = scalar_lea.hbm %s2259_s0, %s1106_s27  ;;  %p1500_p8 = pnand %p1498_p1, %p1486_p12 }
  0x50   : > { %p1506_p2 = scmp.lt.s32.totalorder %s1504_s8, %s1497_s12 }
  0x51   : > { %p1501_p4 = pneg %p1500_p8 }
  0x52   : > { %p1507_p7 = por %p1506_p2, %p1505_p13 }
  0x54   : > { %p1508_p5 = pnand %p1507_p7, %p1501_p4 }
  0x56   : > { %1511 = shalt.err (!%p1508_p5)
}
  0x57   : > { %s1687_s11 = smov 64   ;;  %s1688_s1 = smov 4  }
  0x58   : > { %1254 = dma.hbm_to_vmem [thread:$0]  (!%p1922_p10), %s183_s20, 512, %s185_s16, %s172_s13, %s1687_s11, %s1687_s11, %s1688_s1  }
  0x59   : > { %s1112_s27 = sshll.u32 %s1668_s21, 5  ;;  %s2260_s29 = sshll.u32 %s1676_s23, 6 }
  0x5a   : > { %s227_s9 = sadd.s32 %s1112_s27, %s2260_s29  ;;  %s221_s3 = scalar_lea.vmem [#allocation8], %s1807_s6 }
  0x5b   : > { %s230_s19 = sshll.u32 %s221_s3, 4  ;;  %s1114_s26 = sshll.u32 %s227_s9, 6  ;;  %s231_s19 = int_to_ptr.vmem [resolvable:$true] %s230_s19 }
  0x5c   : > { %s229_s18 = scalar_lea.hbm %s2209_s2, %s1114_s26  ;;  %s1525_s8 = scalar_lea.vmem %s231_s19, 2048 }
  0x5d   : > { %p1526_p5 = scmp.ne.s32.totalorder %s231_s19, %s1525_s8  ;;  %p2261_p12 = pneg %p1821_p6 }
  0x5e   : > { %s1689_s0 = smov [#allocation8]  }
  0x5f   : > { %p1528_p1 = pnand %p1526_p5, %p2261_p12  ;;  %s1530_s28 = sshll.u32 %s1689_s0, 4  ;;  %s1531_s28 = int_to_ptr.vmem [resolvable:$false] %s1530_s28 }
  0x60   : > { %s1532_s16 = scalar_lea.vmem %s1531_s28, 4096  ;;  %p1533_p10 = scmp.lt.s32.totalorder %s231_s19, %s1531_s28 }
  0x61   : > { %p1529_p8 = pneg %p1528_p1  ;;  %p1534_p4 = scmp.lt.s32.totalorder %s1532_s16, %s1525_s8 }
  0x63   : > { %p1535_p13 = por %p1534_p4, %p1533_p10 }
  0x65   : > { %p1536_p2 = pnand %p1535_p13, %p1529_p8 }
  0x67   : > { %1539 = shalt.err (!%p1536_p2)
}
  0x68   : > { %1260 = dma.hbm_to_vmem [thread:$0]  (!%p1821_p6), %s229_s18, 2048, %s231_s19, %s1825_s5, %s1687_s11, %s1687_s11, %s1688_s1  }
  0x69   : > { %242 = sbr.rel (%p1837_p9) target bundleno = 674 (0x2a2), region = 32  ;;  %s2262_s6 = sld [smem:[#allocation15_spill]] (!%p1837_p9) }
  0x6f   : > { %s1949_s13 = sand.u32 1, %s2262_s6  }
  0x70   : > { %s1116_s0 = sshll.u32 %s1949_s13, 5  ;;  %s245_s27 = scalar_lea.sflag [#allocation4], %s1949_s13 }
  0x71   : > { %s1953_s29 = scalar_lea.vmem [#allocation3], %s1116_s0 }
  0x72   : > { %1619 = dma.done.wait (%p1874_p0), %s245_s27, 512  }
  0x73   : > { %1621 = vsyncadd (%p1874_p0), %s245_s27, 4294966784  ;;  %s2264_s30 = sld [smem:[#allocation19_spill]] }
  0x74   : > { %s2265_s5 = sld [smem:[#allocation13_spill]] }
  0x79   : > { %s253_s10 = sand.u32 1, %s2264_s30  }
  0x7a   : > { %s255_s1 = sand.u32 1, %s2265_s5   ;;  %s254_s3 = scalar_lea.sflag [#allocation7], %s253_s10 }
  0x7b   : > { %s1117_s9 = sshll.u32 %s255_s1, 7 }
  0x7c   : > { %s1961_s19 = scalar_lea.vmem [#allocation6], %s1117_s9 }
  0x7d   : > { %1623 = dma.done.wait (%p1881_p3), %s254_s3, 4096  }
  0x7e   : > { %1625 = vsyncadd (%p1881_p3), %s254_s3, 4294963200  ;;  %s1967_s26 = scalar_lea.vmem [#allocation8], %s1117_s9  ;;  %s1969_s12 = scalar_lea.vmem [#allocation9], %s1116_s0 }
  0x7f   : > { %s2267_s15 = sld [smem:[#allocation16_spill]] }
  0x85   : > { %p1120_p6 = scmp.ne.s32.totalorder %s2267_s15, 0 }
  0x87   : > { %307 = sbr.rel (%p1120_p6) target bundleno = 145 (0x91), region = 48 }
  0x8c   : > { %v1690_v0 = vmov 0.0  }
  0x8d   : > { %308 = vst [vmem:[#allocation2 + $0x30] sm:$0xff] %v1690_v0  ;;  %309 = vst [vmem:[#allocation2] sm:$0xff] %v1690_v0 }
  0x8e   : > { %310 = vst [vmem:[#allocation2 + $0x18] sm:$0xff] %v1690_v0  ;;  %311 = vst [vmem:[#allocation2 + $0x10] sm:$0xff] %v1690_v0 }
  0x8f   : > { %312 = vst [vmem:[#allocation2 + $0x8] sm:$0xff] %v1690_v0  ;;  %313 = vst [vmem:[#allocation2 + $0x20] sm:$0xff] %v1690_v0 }
  0x90   : > { %314 = vst [vmem:[#allocation2 + $0x28] sm:$0xff] %v1690_v0  ;;  %315 = vst [vmem:[#allocation2 + $0x38] sm:$0xff] %v1690_v0 }
  0x91 PF: > { %v1380_v1 = vld [vmem:[%s1961_s19 + $0x74] ss:$8 sps:$4 sm:$0xff]   ;;  %v1382_v2 = vld [vmem:[%s1961_s19 + $0x70] ss:$8 sps:$4 sm:$0xff]   ;;  %v1691_v3 = vmov 0   ;;  %v1404_v18 = vld [vmem:[%s1953_s29] sm:$0xff]  }
  0x92   : > { %476 = vmatprep.mubr.bf16.mxu0 %v1691_v3  ;;  %444 = vmatprep.subr.bf16.mxu0 %v1380_v1  ;;  %v1383_v4 = vld [vmem:[%s1961_s19 + $0x64] ss:$8 sps:$4 sm:$0xff]   ;;  %v1385_v5 = vld [vmem:[%s1961_s19 + $0x60] ss:$8 sps:$4 sm:$0xff]   ;;  %v1386_v6 = vld [vmem:[%s1961_s19 + $0x54] ss:$8 sps:$4 sm:$0xff]  }
  0x93   : > { %445 = vmatpush1.bf16.msra.mxu0 %v1382_v2  ;;  %v1388_v7 = vld [vmem:[%s1961_s19 + $0x50] ss:$8 sps:$4 sm:$0xff]   ;;  %v1389_v8 = vld [vmem:[%s1961_s19 + $0x44] ss:$8 sps:$4 sm:$0xff]   ;;  %v1391_v9 = vld [vmem:[%s1961_s19 + $0x40] ss:$8 sps:$4 sm:$0xff]  }
  0x94   : > { %446 = vmatprep.subr.bf16.mxu0 %v1383_v4  ;;  %v1392_v10 = vld [vmem:[%s1961_s19 + $0x34] ss:$8 sps:$4 sm:$0xff]   ;;  %v1394_v11 = vld [vmem:[%s1961_s19 + $0x30] ss:$8 sps:$4 sm:$0xff]   ;;  %v1395_v12 = vld [vmem:[%s1961_s19 + $0x24] ss:$8 sps:$4 sm:$0xff]  }
  0x95   : > { %v1397_v13 = vld [vmem:[%s1961_s19 + $0x20] ss:$8 sps:$4 sm:$0xff]   ;;  %v1398_v14 = vld [vmem:[%s1961_s19 + $0x14] ss:$8 sps:$4 sm:$0xff]   ;;  %v1400_v15 = vld [vmem:[%s1961_s19 + $0x10] ss:$8 sps:$4 sm:$0xff]  }
  0x96   : > { %v1401_v16 = vld [vmem:[%s1961_s19 + $0x4] ss:$8 sps:$4 sm:$0xff]   ;;  %v1403_v17 = vld [vmem:[%s1961_s19] ss:$8 sps:$4 sm:$0xff]   ;;  %v1406_v20 = vld [vmem:[%s1953_s29 + $0x10] sm:$0xff]   ;;  %s2268_s18 = sld [smem:[#allocation16_spill]] }
  0x97   : > { %447 = vmatpush1.bf16.msra.mxu0 %v1385_v5  ;;  %v1405_v19 = vld [vmem:[%s1953_s29 + $0x8] sm:$0xff]   ;;  %v1407_v21 = vld [vmem:[%s1953_s29 + $0x18] sm:$0xff]   ;;  %v1410_v24 = vld [vmem:[%s1967_s26 + $0x70] sm:$0xff]  }
  0x98   : > { %448 = vmatprep.subr.bf16.mxu0 %v1386_v6  ;;  %v1408_v22 = vld [vmem:[%s1967_s26 + $0x78] sm:$0xff]   ;;  %v1411_v25 = vld [vmem:[%s1967_s26 + $0x30] sm:$0xff]   ;;  %v1412_v26 = vld [vmem:[%s1967_s26 + $0x68] sm:$0xff]  }
  0x99   : > { %v1409_v23 = vld [vmem:[%s1967_s26 + $0x38] sm:$0xff]   ;;  %1203 = vmatprep.subr.bf16.mxu1 %v1408_v22  ;;  %v1413_v27 = vld [vmem:[%s1967_s26 + $0x28] sm:$0xff]   ;;  %v1414_v28 = vld [vmem:[%s1967_s26 + $0x60] sm:$0xff]  }
  0x9a   : > { %1204 = vmatpush3.bf16.msra.mxu1 %v1409_v23  ;;  %v1415_v29 = vld [vmem:[%s1967_s26 + $0x20] sm:$0xff]   ;;  %v1416_v30 = vld [vmem:[%s1967_s26 + $0x58] sm:$0xff]   ;;  %v1418_v32 = vld [vmem:[%s1967_s26 + $0x50] sm:$0xff]  }
  0x9b   : > { %449 = vmatpush1.bf16.msra.mxu0 %v1388_v7  ;;  %1205 = vmatprep.subr.bf16.mxu1 %v1410_v24  ;;  %v1417_v31 = vld [vmem:[%s1967_s26 + $0x18] sm:$0xff]   ;;  %v1419_v33 = vld [vmem:[%s1967_s26 + $0x10] sm:$0xff]   ;;  %v1420_v34 = vld [vmem:[%s1967_s26 + $0x48] sm:$0xff]  }
  0x9c   : > { %450 = vmatprep.subr.bf16.mxu0 %v1389_v8  ;;  %v1421_v35 = vld [vmem:[%s1967_s26 + $0x8] sm:$0xff]   ;;  %v1422_v36 = vld [vmem:[%s1967_s26 + $0x40] sm:$0xff]   ;;  %p1157_p9 = scmp.ne.s32.totalorder %s2268_s18, 1 }
  0x9d   : > { %v1423_v37 = vld [vmem:[%s1967_s26] sm:$0xff]  }
  0x9e   : > { %1206 = vmatpush3.bf16.msra.mxu1 %v1411_v25 }
  0x9f   : > { %451 = vmatpush1.bf16.msra.mxu0 %v1391_v9  ;;  %1207 = vmatprep.subr.bf16.mxu1 %v1412_v26 }
  0xa0   : > { %452 = vmatprep.subr.bf16.mxu0 %v1392_v10 }
  0xa2   : > { %1208 = vmatpush3.bf16.msra.mxu1 %v1413_v27 }
  0xa3   : > { %453 = vmatpush1.bf16.msra.mxu0 %v1394_v11  ;;  %1209 = vmatprep.subr.bf16.mxu1 %v1414_v28 }
  0xa4   : > { %454 = vmatprep.subr.bf16.mxu0 %v1395_v12 }
  0xa6   : > { %1210 = vmatpush3.bf16.msra.mxu1 %v1415_v29 }
  0xa7   : > { %455 = vmatpush1.bf16.msra.mxu0 %v1397_v13  ;;  %1211 = vmatprep.subr.bf16.mxu1 %v1416_v30 }
  0xa8   : > { %456 = vmatprep.subr.bf16.mxu0 %v1398_v14 }
  0xaa   : > { %1212 = vmatpush3.bf16.msra.mxu1 %v1417_v31 }
  0xab   : > { %457 = vmatpush1.bf16.msra.mxu0 %v1400_v15  ;;  %1213 = vmatprep.subr.bf16.mxu1 %v1418_v32 }
  0xac   : > { %458 = vmatprep.subr.bf16.mxu0 %v1401_v16 }
  0xae   : > { %1214 = vmatpush3.bf16.msra.mxu1 %v1419_v33 }
  0xaf   : > { %459 = vmatpush1.bf16.msra.mxu0 %v1403_v17  ;;  %1215 = vmatprep.subr.bf16.mxu1 %v1420_v34 }
  0xb2   : > { %477 = vmatmul.mubr.bf16.vlgmr.msra.gmra.mxu0 %v1404_v18  ;;  %1216 = vmatpush3.bf16.msra.mxu1 %v1421_v35 }
  0xb3   : > { %486 = vmatprep.mubr.bf16.mxu0 %v1691_v3  ;;  %1217 = vmatprep.subr.bf16.mxu1 %v1422_v36 }
  0xb6   : > { %1218 = vmatpush3.bf16.msra.mxu1 %v1423_v37 }
  0xba   : > { %487 = vmatmul.mubr.bf16.gmra.mxu0 %v1405_v19 }
  0xbb   : > { %496 = vmatprep.mubr.bf16.mxu0 %v1691_v3 }
  0xc2   : > { %497 = vmatmul.mubr.bf16.gmra.mxu0 %v1406_v20 }
  0xc3   : > { %506 = vmatprep.mubr.bf16.mxu0 %v1691_v3 }
  0xca   : > { %507 = vmatmul.mubr.bf16.gmra.mxu0 %v1407_v21 }
 0x172   : > { %v2008_v38 = vpop.f32.mrf.mxu0 }
 0x173   : > { %v533_v39 = vmul.f32 %v2008_v38, %v2008_v38 }
 0x174   : > { %v2012_v40 = vpop.f32.mrf.mxu0 }
 0x175   : > { %v549_v41 = vmul.f32 %v533_v39, %v2008_v38  ;;  %v534_v42 = vmul.f32 %v2012_v40, %v2012_v40  ;;  %v517_v39 = vmul.f32 0.5, %v2008_v38 }
 0x176   : > { %v2017_v43 = vpop.f32.mrf.mxu0 }
 0x177   : > { %v565_v44 = vmul.f32 0.044715, %v549_v41  ;;  %v550_v45 = vmul.f32 %v534_v42, %v2012_v40  ;;  %v535_v46 = vmul.f32 %v2017_v43, %v2017_v43 }
 0x178   : > { %v2022_v47 = vpop.f32.mrf.mxu0 }
 0x179   : > { %v581_v48 = vadd.f32 %v565_v44, %v2008_v38  ;;  %v566_v49 = vmul.f32 0.044715, %v550_v45  ;;  %v551_v50 = vmul.f32 %v535_v46, %v2017_v43  ;;  %v536_v51 = vmul.f32 %v2022_v47, %v2022_v47 }
 0x17a   : > { %v2028_v52 = vpop.f32.mrf.mxu0 }
 0x17b   : > { %v597_v53 = vmul.f32 0.7978845, %v581_v48  ;;  %v582_v54 = vadd.f32 %v566_v49, %v2012_v40  ;;  %v567_v55 = vmul.f32 0.044715, %v551_v50  ;;  %v552_v56 = vmul.f32 %v536_v51, %v2022_v47 }
 0x17c   : > { %v537_v57 = vmul.f32 %v2028_v52, %v2028_v52  ;;  %v2034_v58 = vpop.f32.mrf.mxu0  ;;  %v518_v50 = vmul.f32 0.5, %v2012_v40  ;;  %v519_v51 = vmul.f32 0.5, %v2017_v43 }
 0x17d   : > { %v598_v59 = vmul.f32 0.7978845, %v582_v54  ;;  %v583_v60 = vadd.f32 %v567_v55, %v2017_v43  ;;  %v568_v61 = vmul.f32 0.044715, %v552_v56  ;;  %1424 = vtanh.f32 %v597_v53 }
 0x17e   : > { %v553_v62 = vmul.f32 %v537_v57, %v2028_v52  ;;  %v538_v63 = vmul.f32 %v2034_v58, %v2034_v58  ;;  %v2040_v0 = vpop.f32.mrf.mxu0  ;;  %v520_v54 = vmul.f32 0.5, %v2022_v47 }
 0x17f   : > { %1426 = vtanh.f32 %v598_v59  ;;  %v599_v1 = vmul.f32 0.7978845, %v583_v60  ;;  %v584_v2 = vadd.f32 %v568_v61, %v2022_v47  ;;  %v539_v5 = vmul.f32 %v2040_v0, %v2040_v0 }
 0x180   : > { %v569_v3 = vmul.f32 0.044715, %v553_v62  ;;  %v554_v4 = vmul.f32 %v538_v63, %v2034_v58  ;;  %v2046_v6 = vpop.f32.mrf.mxu0 }
 0x181   : > { %v600_v7 = vmul.f32 0.7978845, %v584_v2  ;;  %v540_v8 = vmul.f32 %v2046_v6, %v2046_v6  ;;  %1428 = vtanh.f32 %v599_v1  ;;  %v555_v11 = vmul.f32 %v539_v5, %v2040_v0 }
 0x182   : > { %v585_v9 = vadd.f32 %v569_v3, %v2028_v52  ;;  %v570_v10 = vmul.f32 0.044715, %v554_v4  ;;  %v2052_v12 = vpop.f32.mrf.mxu0 }
 0x183   : > { %1430 = vtanh.f32 %v600_v7  ;;  %v556_v13 = vmul.f32 %v540_v8, %v2046_v6  ;;  %v541_v14 = vmul.f32 %v2052_v12, %v2052_v12  ;;  %v571_v16 = vmul.f32 0.044715, %v555_v11 }
 0x184   : > { %v586_v15 = vadd.f32 %v570_v10, %v2034_v58  ;;  %v2058_v17 = vpop.f32.mrf.mxu0  ;;  %v601_v18 = vmul.f32 0.7978845, %v585_v9 }
 0x185   : > { %v572_v19 = vmul.f32 0.044715, %v556_v13  ;;  %v557_v20 = vmul.f32 %v541_v14, %v2052_v12  ;;  %v542_v21 = vmul.f32 %v2058_v17, %v2058_v17  ;;  %v587_v23 = vadd.f32 %v571_v16, %v2040_v0 }
 0x186   : > { %v602_v22 = vmul.f32 0.7978845, %v586_v15  ;;  %v2064_v24 = vpop.f32.mrf.mxu0 }
 0x187   : > { %v588_v25 = vadd.f32 %v572_v19, %v2046_v6  ;;  %v573_v26 = vmul.f32 0.044715, %v557_v20  ;;  %v558_v27 = vmul.f32 %v542_v21, %v2058_v17  ;;  %v603_v28 = vmul.f32 0.7978845, %v587_v23 }
 0x188   : > { %1432 = vtanh.f32 %v602_v22  ;;  %v543_v29 = vmul.f32 %v2064_v24, %v2064_v24  ;;  %v2070_v30 = vpop.f32.mrf.mxu0 }
 0x189   : > { %1434 = vtanh.f32 %v601_v18  ;;  %v604_v31 = vmul.f32 0.7978845, %v588_v25  ;;  %v589_v32 = vadd.f32 %v573_v26, %v2052_v12  ;;  %v574_v33 = vmul.f32 0.044715, %v558_v27 }
 0x18a   : > { %1436 = vtanh.f32 %v603_v28  ;;  %v559_v34 = vmul.f32 %v543_v29, %v2064_v24  ;;  %v544_v35 = vmul.f32 %v2070_v30, %v2070_v30  ;;  %v2076_v36 = vpop.f32.mrf.mxu0  ;;  %v1425_v37 = vpop.eup %1424  ;;  %v522_v28 = vmul.f32 0.5, %v2034_v58 }
 0x18b   : > { %1438 = vtanh.f32 %v604_v31  ;;  %v605_v41 = vmul.f32 0.7978845, %v589_v32  ;;  %v590_v42 = vadd.f32 %v574_v33, %v2058_v17  ;;  %v545_v48 = vmul.f32 %v2076_v36, %v2076_v36 }
 0x18c   : > { %v1427_v44 = vpop.eup %1426  ;;  %v575_v45 = vmul.f32 0.044715, %v559_v34  ;;  %v560_v46 = vmul.f32 %v544_v35, %v2070_v30  ;;  %v2083_v49 = vpop.f32.mrf.mxu0  ;;  %v629_v62 = vadd.f32 1.0, %v1425_v37 }
 0x18d   : > { %v606_v53 = vmul.f32 0.7978845, %v590_v42  ;;  %v546_v38 = vmul.f32 %v2083_v49, %v2083_v49  ;;  %v561_v57 = vmul.f32 %v545_v48, %v2076_v36  ;;  %v630_v60 = vadd.f32 1.0, %v1427_v44 }
 0x18e   : > { %v591_v55 = vadd.f32 %v575_v45, %v2064_v24  ;;  %v576_v56 = vmul.f32 0.044715, %v560_v46  ;;  %v2092_v59 = vpop.f32.mrf.mxu0  ;;  %v1429_v61 = vpop.eup %1428  ;;  %1440 = vtanh.f32 %v605_v41  ;;  %v645_v20 = vmul.f32 %v629_v62, %v517_v39 }
 0x18f   : > { %v562_v40 = vmul.f32 %v546_v38, %v2083_v49  ;;  %v547_v43 = vmul.f32 %v2092_v59, %v2092_v59  ;;  %1442 = vtanh.f32 %v606_v53  ;;  %v577_v2 = vmul.f32 0.044715, %v561_v57 }
 0x190   : > { %v1431_v63 = vpop.eup %1430  ;;  %v607_v1 = vmul.f32 0.7978845, %v591_v55  ;;  %v592_v47 = vadd.f32 %v576_v56, %v2070_v30  ;;  %v2098_v3 = vpop.f32.mrf.mxu0  ;;  %v646_v8 = vmul.f32 %v630_v60, %v518_v50  ;;  %v631_v16 = vadd.f32 1.0, %v1429_v61 }
 0x191   : > { %v578_v4 = vmul.f32 0.044715, %v562_v40  ;;  %v563_v5 = vmul.f32 %v547_v43, %v2092_v59  ;;  %v548_v7 = vmul.f32 %v2098_v3, %v2098_v3  ;;  %v593_v10 = vadd.f32 %v577_v2, %v2076_v36 }
 0x192   : > { %1444 = vtanh.f32 %v607_v1  ;;  %v608_v9 = vmul.f32 0.7978845, %v592_v47  ;;  %v632_v11 = vadd.f32 1.0, %v1431_v63  ;;  %v647_v26 = vmul.f32 %v631_v16, %v519_v51 }
 0x193   : > { %v594_v13 = vadd.f32 %v578_v4, %v2083_v49  ;;  %v579_v14 = vmul.f32 0.044715, %v563_v5  ;;  %v564_v15 = vmul.f32 %v548_v7, %v2098_v3  ;;  %v609_v18 = vmul.f32 0.7978845, %v593_v10 }
 0x194   : > { %1446 = vtanh.f32 %v608_v9  ;;  %v648_v19 = vmul.f32 %v632_v11, %v520_v54  ;;  %v669_v35 = vpack.c.bf16 %v647_v26, %v645_v20  ;;  %v523_v39 = vmul.f32 0.5, %v2040_v0 }
 0x195   : > { %v1433_v21 = vpop.eup %1432  ;;  %v610_v22 = vmul.f32 0.7978845, %v594_v13  ;;  %v595_v23 = vadd.f32 %v579_v14, %v2092_v59  ;;  %v580_v25 = vmul.f32 0.044715, %v564_v15  ;;  %v524_v41 = vmul.f32 0.5, %v2046_v6 }
 0x196   : > { %v1435_v27 = vpop.eup %1434  ;;  %v670_v29 = vpack.c.bf16 %v648_v19, %v646_v8  ;;  %v634_v31 = vadd.f32 1.0, %v1433_v21  ;;  %v521_v46 = vmul.f32 0.5, %v2028_v52  ;;  %v527_v61 = vmul.f32 0.5, %v2064_v24 }
 0x197   : > { %v1437_v32 = vpop.eup %1436  ;;  %1448 = vtanh.f32 %v610_v22  ;;  %v611_v33 = vmul.f32 0.7978845, %v595_v23  ;;  %v596_v34 = vadd.f32 %v580_v25, %v2098_v3  ;;  %v633_v45 = vadd.f32 1.0, %v1435_v27 }
 0x198   : > { %v1439_v37 = vpop.eup %1438  ;;  %1450 = vtanh.f32 %v609_v18  ;;  %837 = vmatprep.mubr.bf16.mxu1 %v670_v29  ;;  %v635_v42 = vadd.f32 1.0, %v1437_v32  ;;  %v650_v48 = vmul.f32 %v634_v31, %v522_v28  ;;  %v526_v52 = vmul.f32 0.5, %v2058_v17 }
 0x199   : > { %1452 = vtanh.f32 %v611_v33  ;;  %v612_v44 = vmul.f32 0.7978845, %v596_v34  ;;  %838 = vmatmul.mubr.bf16.vlgmr.msra.gmra.mxu1 %v669_v35  ;;  %v636_v58 = vadd.f32 1.0, %v1439_v37  ;;  %v649_v0 = vmul.f32 %v633_v45, %v521_v46  ;;  %v663_v33 = vld [vmem:[#allocation2 + $0x18] sm:$0xff]  ;;  %v665_v46 = vld [vmem:[#allocation2 + $0x8] sm:$0xff] }
 0x19a   : > { %v651_v51 = vmul.f32 %v635_v42, %v523_v39  ;;  %v528_v43 = vmul.f32 0.5, %v2070_v30  ;;  %v525_v63 = vmul.f32 0.5, %v2052_v12  ;;  %v530_v14 = vmul.f32 0.5, %v2083_v49  ;;  %v661_v49 = vld [vmem:[#allocation2 + $0x30] sm:$0xff] }
 0x19b   : > { %1454 = vtanh.f32 %v612_v44  ;;  %v652_v50 = vmul.f32 %v636_v58, %v524_v41  ;;  %v1441_v53 = vpop.eup %1440  ;;  %v531_v17 = vmul.f32 0.5, %v2092_v59  ;;  %v532_v30 = vmul.f32 0.5, %v2098_v3  ;;  %v662_v3 = vld [vmem:[#allocation2] sm:$0xff]  ;;  %v664_v41 = vld [vmem:[#allocation2 + $0x10] sm:$0xff] }
 0x19c   : > { %v1443_v38 = vpop.eup %1442  ;;  %v671_v6 = vpack.c.bf16 %v651_v51, %v649_v0  ;;  %v637_v40 = vadd.f32 1.0, %v1441_v53  ;;  %v529_v16 = vmul.f32 0.5, %v2076_v36 }
 0x19d   : > { %v672_v54 = vpack.c.bf16 %v652_v50, %v650_v48  ;;  %v638_v56 = vadd.f32 1.0, %v1443_v38  ;;  %v666_v38 = vld [vmem:[#allocation2 + $0x20] sm:$0xff] }
 0x19e   : > { %v653_v7 = vmul.f32 %v637_v40, %v525_v63 }
 0x19f   : > { %v1445_v55 = vpop.eup %1444  ;;  %845 = vmatprep.mubr.bf16.mxu1 %v672_v54  ;;  %v654_v2 = vmul.f32 %v638_v56, %v526_v52  ;;  %v667_v56 = vld [vmem:[#allocation2 + $0x28] sm:$0xff]  ;;  %v668_v52 = vld [vmem:[#allocation2 + $0x38] sm:$0xff] }
 0x1a0   : > { %v639_v57 = vadd.f32 1.0, %v1445_v55 }
 0x1a1   : > { %v1447_v60 = vpop.eup %1446  ;;  %846 = vmatmul.mubr.bf16.gmra.mxu1 %v671_v6 }
 0x1a2   : > { %v640_v62 = vadd.f32 1.0, %v1447_v60  ;;  %v655_v1 = vmul.f32 %v639_v57, %v527_v61 }
 0x1a4   : > { %v1449_v47 = vpop.eup %1448  ;;  %v656_v4 = vmul.f32 %v640_v62, %v528_v43  ;;  %v673_v10 = vpack.c.bf16 %v655_v1, %v653_v7 }
 0x1a5   : > { %v1451_v5 = vpop.eup %1450  ;;  %v642_v11 = vadd.f32 1.0, %v1449_v47 }
 0x1a6   : > { %v1453_v8 = vpop.eup %1452  ;;  %v674_v9 = vpack.c.bf16 %v656_v4, %v654_v2  ;;  %v641_v15 = vadd.f32 1.0, %v1451_v5 }
 0x1a7   : > { %v643_v24 = vadd.f32 1.0, %v1453_v8  ;;  %v658_v19 = vmul.f32 %v642_v11, %v530_v14 }
 0x1a8   : > { %v1455_v13 = vpop.eup %1454  ;;  %853 = vmatprep.mubr.bf16.mxu1 %v674_v9  ;;  %v657_v22 = vmul.f32 %v641_v15, %v529_v16 }
 0x1a9   : > { %v644_v12 = vadd.f32 1.0, %v1455_v13  ;;  %854 = vmatmul.mubr.bf16.gmra.mxu1 %v673_v10  ;;  %v659_v20 = vmul.f32 %v643_v24, %v531_v17 }
 0x1ab   : > { %v660_v18 = vmul.f32 %v644_v12, %v532_v30  ;;  %v675_v23 = vpack.c.bf16 %v659_v20, %v657_v22 }
 0x1ad   : > { %v676_v21 = vpack.c.bf16 %v660_v18, %v658_v19 }
 0x1af   : > { %861 = vmatprep.mubr.bf16.mxu1 %v676_v21 }
 0x1b1   : > { %862 = vmatmul.mubr.bf16.gmra.mxu1 %v675_v23 }
 0x259   : > { %v1219_v25 = vpop.f32.mrf.mxu1 }
 0x25b   : > { %v1220_v26 = vpop.f32.mrf.mxu1 }
 0x25c   : > { %v1221_v27 = vadd.f32 %v1220_v26, %v1219_v25 }
 0x25d   : > { %v1222_v59 = vpop.f32.mrf.mxu1 }
 0x25e   : > { %v870_v28 = vadd.f32 %v1221_v27, %v661_v49 }
 0x25f   : > { %v1223_v29 = vpop.f32.mrf.mxu1 }
 0x260   : > { %878 = vst [vmem:[#allocation2 + $0x30] sm:$0xff] %v870_v28  ;;  %v1224_v31 = vadd.f32 %v1223_v29, %v1222_v59 }
 0x261   : > { %v1225_v32 = vpop.f32.mrf.mxu1 }
 0x262   : > { %v871_v36 = vadd.f32 %v1224_v31, %v662_v3 }
 0x263   : > { %v1226_v34 = vpop.f32.mrf.mxu1 }
 0x264   : > { %879 = vst [vmem:[#allocation2] sm:$0xff] %v871_v36  ;;  %v1227_v35 = vadd.f32 %v1226_v34, %v1225_v32 }
 0x265   : > { %v1228_v37 = vpop.f32.mrf.mxu1 }
 0x266   : > { %v872_v39 = vadd.f32 %v1227_v35, %v663_v33 }
 0x267   : > { %v1229_v42 = vpop.f32.mrf.mxu1 }
 0x268   : > { %880 = vst [vmem:[#allocation2 + $0x18] sm:$0xff] %v872_v39  ;;  %v1230_v44 = vadd.f32 %v1229_v42, %v1228_v37 }
 0x269   : > { %v1231_v58 = vpop.f32.mrf.mxu1 }
 0x26a   : > { %v873_v45 = vadd.f32 %v1230_v44, %v664_v41 }
 0x26b   : > { %v1232_v48 = vpop.f32.mrf.mxu1 }
 0x26c   : > { %881 = vst [vmem:[#allocation2 + $0x10] sm:$0xff] %v873_v45  ;;  %v1233_v50 = vadd.f32 %v1232_v48, %v1231_v58 }
 0x26d   : > { %v1234_v51 = vpop.f32.mrf.mxu1 }
 0x26e   : > { %v874_v53 = vadd.f32 %v1233_v50, %v665_v46 }
 0x26f   : > { %v1235_v54 = vpop.f32.mrf.mxu1 }
 0x270   : > { %882 = vst [vmem:[#allocation2 + $0x8] sm:$0xff] %v874_v53  ;;  %v1236_v0 = vadd.f32 %v1235_v54, %v1234_v51 }
 0x271   : > { %v1237_v55 = vpop.f32.mrf.mxu1 }
 0x272   : > { %v875_v6 = vadd.f32 %v1236_v0, %v666_v38 }
 0x273   : > { %v1238_v57 = vpop.f32.mrf.mxu1 }
 0x274   : > { %883 = vst [vmem:[#allocation2 + $0x20] sm:$0xff] %v875_v6  ;;  %v1239_v60 = vadd.f32 %v1238_v57, %v1237_v55 }
 0x275   : > { %v1240_v61 = vpop.f32.mrf.mxu1 }
 0x276   : > { %v876_v40 = vadd.f32 %v1239_v60, %v667_v56 }
 0x277   : > { %v1241_v43 = vpop.f32.mrf.mxu1 }
 0x278   : > { %884 = vst [vmem:[#allocation2 + $0x28] sm:$0xff] %v876_v40  ;;  %v1242_v62 = vadd.f32 %v1241_v43, %v1240_v61  ;;  %889 = sbr.rel (%p1157_p9) target bundleno = 647 (0x287), region = 52 }
 0x27a   : > { %v877_v63 = vadd.f32 %v1242_v62, %v668_v52 }
 0x27c   : > { %885 = vst [vmem:[#allocation2 + $0x38] sm:$0xff] %v877_v63 }
 0x27d   : > { %v890_v1 = vld [vmem:[#allocation2 + $0x30] sm:$0xff]  ;;  %v891_v47 = vld [vmem:[#allocation2] sm:$0xff]  ;;  %v892_v2 = vld [vmem:[#allocation2 + $0x18] sm:$0xff] }
 0x27e   : > { %v1183_v4 = vpack.c.bf16 %v891_v47, %v890_v1  ;;  %v893_v5 = vld [vmem:[#allocation2 + $0x10] sm:$0xff]  ;;  %v894_v7 = vld [vmem:[#allocation2 + $0x8] sm:$0xff]  ;;  %v895_v8 = vld [vmem:[#allocation2 + $0x20] sm:$0xff] }
 0x27f   : > { %v1188_v9 = vpack.c.bf16 %v893_v5, %v892_v2  ;;  %v1193_v10 = vpack.c.bf16 %v895_v8, %v894_v7  ;;  %v896_v11 = vld [vmem:[#allocation2 + $0x28] sm:$0xff] }
 0x280   : > { %1184 = vst [vmem:[%s1969_s12] sm:$0xff] %v1183_v4  }
 0x281   : > { %1200 = vst [vmem:[%s1969_s12 + $0x8] sm:$0xff] %v1188_v9   ;;  %1201 = vst [vmem:[%s1969_s12 + $0x10] sm:$0xff] %v1193_v10  }
 0x283   : > { %v897_v24 = vld [vmem:[#allocation2 + $0x38] sm:$0xff] }
 0x284   : > { %v1198_v13 = vpack.c.bf16 %v897_v24, %v896_v11 }
 0x286   : > { %1202 = vst [vmem:[%s1969_s12 + $0x18] sm:$0xff] %v1198_v13  }
 0x287 PF: > { %s2269_s8 = sld [smem:[#allocation17_spill]]  ;;  %s954_s0 = sshll.u32 %s1969_s12, 4  ;;  %s2128_s0 = int_to_ptr.vmem [resolvable:$true] %s954_s0 }
 0x288   : > { %s2270_s28 = sld [smem:[#allocation18_spill]]  ;;  %s939_s1 = scalar_lea.sflag [#allocation5], %s1949_s13 }
 0x289   : > { %s2272_s11 = sld [smem:[#allocation28_spill]]  ;;  %s1540_s9 = scalar_lea.vmem %s2128_s0, 512 }
 0x28a   : > { %p1541_p0 = scmp.ne.s32.totalorder %s2128_s0, %s1540_s9  ;;  %s1692_s3 = smov [#allocation9]  }
 0x28b   : > { %s1544_s19 = sshll.u32 %s1692_s3, 4  ;;  %s1545_s19 = int_to_ptr.vmem [resolvable:$false] %s1544_s19 }
 0x28c   : > { %p1542_p3 = pnand %p1541_p0, %p1891_p11  ;;  %s1546_s26 = scalar_lea.vmem %s1545_s19, 1024 }
 0x28d   : > { %s1167_s6 = sshll.u32 %s2269_s8, 3  ;;  %p1547_p5 = scmp.lt.s32.totalorder %s2128_s0, %s1545_s19 }
 0x28e   : > { %s1168_s20 = sshll.u32 %s2270_s28, 4  ;;  %p1543_p7 = pneg %p1542_p3 }
 0x28f   : > { %s951_s27 = sadd.s32 %s1168_s20, %s1167_s6  ;;  %p1548_p12 = scmp.lt.s32.totalorder %s1546_s26, %s1540_s9 }
 0x290   : > { %s1169_s29 = sshll.u32 %s951_s27, 6 }
 0x291   : > { %s2133_s10 = scalar_lea.hbm %s2272_s11, %s1169_s29  ;;  %p1549_p1 = por %p1548_p12, %p1547_p5 }
 0x293   : > { %p1550_p8 = pnand %p1549_p1, %p1543_p7 }
 0x295   : > { %1553 = shalt.err (!%p1550_p8)
}
 0x296   : > { %s1554_s12 = scalar_lea.hbm %s2133_s10, 512  ;;  %s1558_s8 = scalar_lea.hbm %s2272_s11, 2048 }
 0x297   : > { %p1555_p10 = scmp.ne.s32.totalorder %s2133_s10, %s1554_s12  ;;  %p1559_p2 = scmp.lt.s32.totalorder %s2133_s10, %s2272_s11 }
 0x298   : > { %p1560_p6 = scmp.lt.s32.totalorder %s1558_s8, %s1554_s12 }
 0x299   : > { %p1556_p4 = pnand %p1555_p10, %p1891_p11 }
 0x29a   : > { %p1561_p9 = por %p1560_p6, %p1559_p2 }
 0x29b   : > { %p1557_p13 = pneg %p1556_p4 }
 0x29d   : > { %p1562_p0 = pnand %p1561_p9, %p1557_p13 }
 0x29f   : > { %1565 = shalt.err (!%p1562_p0)
}
 0x2a0   : > { %s1693_s20 = smov 64   ;;  %s1694_s27 = smov 4  }
 0x2a1   : > { %1249 = dma.vmem_to_hbm [thread:$0]  (%p1891_p11), %s2128_s0, 512, %s2133_s10, %s939_s1, %s1693_s20, %s1693_s20, %s1694_s27  }
 0x2a2 PF: > { %s2273_s29 = sld [smem:[#allocation14_spill]]  ;;  %p1266_p3 = scmp.ge.s32.totalorder %s1680_s24, 2 }
 0x2a3   : > { %s2274_s30 = sld [smem:[#allocation25_spill]] }
 0x2a8   : > { %s969_s5 = sand.u32 1, %s2273_s29  }
 0x2a9   : > { %p2275_p7 = scmp.ne.s32.totalorder %s2274_s30, 0  ;;  %s970_s9 = scalar_lea.sflag [#allocation5], %s969_s5 }
 0x2ab   : > { %p1262_p5 = pnand %p1266_p3, %p2275_p7 }
 0x2ad   : > { %p1263_p12 = pneg %p1262_p5 }
 0x2af   : > { %1627 = dma.done.wait (%p1263_p12), %s970_s9, 512  }
 0x2b0   : > { %1629 = vsyncadd (%p1263_p12), %s970_s9, 4294966784  ;;  %s22_s24 = sadd.s32 1, %s1680_s24   ;;  %s2277_s12 = sld [smem:[#allocation13_spill]] }
 0x2b1   : > { %p2163_p1 = scmp.ge.s32.totalorder %s22_s24, 10   ;;  %s2278_s15 = sld [smem:[#allocation15_spill]] }
 0x2b2   : > { %s2279_s0 = sld [smem:[#allocation20_spill]]  ;;  %s2281_s13 = smov %s1640_s14 }
 0x2b3   : > { %s2280_s10 = sld [smem:[#allocation23_spill]]  ;;  %s2282_s14 = smov %s1914_s7 }
 0x2b4   : > { %s2283_s16 = smov %s1652_s17  ;;  %s2284_s17 = smov %s1909_s4 }
 0x2b5   : > { %s2285_s18 = smov %s1668_s21  ;;  %s2286_s19 = smov %s1672_s22 }
 0x2b6   : > { %s2287_s20 = smov %s1676_s23  ;;  %s2288_s21 = smov %s2292_s25 }
 0x2b7   :  { %21 = sbr.rel (!%p2163_p1) target bundleno = 16 (0x10), region = 109 }
 0x2b8   : > { %s2289_s22 = smov %s2279_s0 }
 0x2b9   : > { %s2290_s23 = smov %s2280_s10 }
 0x2bc   :  { %975 = vsyncpa [#allocation4], 1 }
 0x2bd   :  { %977 = vsyncpa [#allocation4 + $0x1], 1 }
 0x2be   :  { %978 = vsyncpa [#allocation7], 1 }
 0x2bf   :  { %980 = vsyncpa [#allocation7 + $0x1], 1 }
 0x2c0   :  { %981 = vsyncpa [#allocation5], 1 }
 0x2c1   :  { %983 = vsyncpa [#allocation5 + $0x1], 1 }

</bundles_post_ra>
